<compile_context>
chip_gen: v7x
topology: tpu7x:2x2x1
jax: 0.10.0
libtpu: 0.0.40
codegen_flags: <defaults>
</compile_context>

<pallas_src>
import functools

import jax
import jax.numpy as jnp
from jax import lax
from jax.experimental import pallas as pl
from jax.experimental.pallas import tpu as pltpu


def _round_up(x: int, m: int) -> int:
    return ((x + m - 1) // m) * m


# ---------------------------------------------------------------------------
# Kernels
# ---------------------------------------------------------------------------

def _ffn_kernel_resident(x_ref, w1_ref, b1_ref, w2_ref, b2_ref, g_ref, beta_ref,
                         o_ref, *, eps: float):
    """Single-pass kernel: W1/W2 fully VMEM-resident, grid = (row_tiles,)."""
    x = x_ref[...]                                     # native dtype into the MXU
    h = jnp.dot(x, w1_ref[...], preferred_element_type=jnp.float32)
    hdt = w2_ref.dtype                                 # bf16 elementwise on bf16 models
    h = jnp.maximum(h.astype(hdt) + b1_ref[...].astype(hdt), 0.0)
    y = jnp.dot(h, w2_ref[...], preferred_element_type=jnp.float32)

    # Epilogue (f32): bias2 + residual + LayerNorm over d_model.
    y = x.astype(jnp.float32) + y + b2_ref[...].astype(jnp.float32)
    mean = jnp.mean(y, axis=-1, keepdims=True)
    c = y - mean
    var = jnp.mean(c * c, axis=-1, keepdims=True)
    out = c * lax.rsqrt(var + eps) * g_ref[...].astype(jnp.float32) \
        + beta_ref[...].astype(jnp.float32)
    o_ref[...] = out.astype(o_ref.dtype)


def _ffn_kernel_chunked(x_ref, w1_ref, b1_ref, w2_ref, b2_ref, g_ref, beta_ref,
                        o_ref, acc_ref, *, eps: float):
    """Fallback for very large D*F: grid = (row_tiles, F_chunks); linear2
    partial products accumulate into an f32 VMEM scratch."""
    f = pl.program_id(1)
    nf = pl.num_programs(1)

    @pl.when(f == 0)
    def _():
        acc_ref[...] = jnp.zeros_like(acc_ref)

    x = x_ref[...]
    h = jnp.dot(x, w1_ref[...], preferred_element_type=jnp.float32)
    hdt = w2_ref.dtype
    h = jnp.maximum(h.astype(hdt) + b1_ref[...].astype(hdt), 0.0)
    acc_ref[...] += jnp.dot(h, w2_ref[...], preferred_element_type=jnp.float32)

    @pl.when(f == nf - 1)
    def _():
        y = x.astype(jnp.float32) + acc_ref[...] + b2_ref[...].astype(jnp.float32)
        mean = jnp.mean(y, axis=-1, keepdims=True)
        c = y - mean
        var = jnp.mean(c * c, axis=-1, keepdims=True)
        out = c * lax.rsqrt(var + eps) * g_ref[...].astype(jnp.float32) \
            + beta_ref[...].astype(jnp.float32)
        o_ref[...] = out.astype(o_ref.dtype)


# ---------------------------------------------------------------------------
# Wrapper
# ---------------------------------------------------------------------------

def ffn_layer(tgt, w1, b1, w2, b2, gamma, beta, *, eps: float = 1e-5,
              tm: int = 512, tf: int = 512, force_chunked: bool = False):
    """Fused FFN + residual + LayerNorm (forward_post, dropout=0.0).

    tgt:   (T, B, D)
    w1:    (D, F)   b1: (F,)
    w2:    (F, D)   b2: (D,)
    gamma: (D,)     beta: (D,)
    """
    T, B, D = tgt.shape
    F = w1.shape[1]
    N = T * B

    # Cast matmul weights to the activation dtype so the MXU sees one dtype
    # (bf16 activations with f32 weights would otherwise promote to f32).
    if w1.dtype != tgt.dtype:
        w1 = w1.astype(tgt.dtype)
    if w2.dtype != tgt.dtype:
        w2 = w2.astype(tgt.dtype)

    xbytes = jnp.dtype(tgt.dtype).itemsize
    wbytes = jnp.dtype(w1.dtype).itemsize

    # --- per-generation VMEM budget (v7x: 64 MiB/TC, v5e/v6e: 128 MiB) -----
    try:
        vmem_cap = int(pltpu.get_tpu_info().vmem_capacity_bytes)
    except Exception:
        vmem_cap = 64 * 1024 * 1024                     # conservative (v7x)
    vmem_budget = (vmem_cap * 3) // 4                   # leave compiler headroom

    # --- row (token) tile ----------------------------------------------------
    row_align = 16 if tgt.dtype == jnp.bfloat16 else 8
    tm_eff = min(tm, _round_up(N, row_align))
    if N > row_align:
        # keep >= 2 row tiles so the "parallel" axis can shard across v7x's
        # two TensorCores (costs ~0.35us extra on 1-TC parts; negligible)
        tm_eff = min(tm_eff, _round_up(pl.cdiv(N, 2), row_align))
    tm_eff = max(row_align, _round_up(tm_eff, row_align))
    n_pad = _round_up(N, tm_eff)
    n_row_tiles = n_pad // tm_eff

    # --- resident-weights (single pass) vs F-chunked decision ---------------
    resident_bytes = (
        2 * D * F * wbytes                      # W1 + W2 (single-buffered)
        + (F + 3 * D) * 4                       # b1/b2/gamma/beta
        + 2 * 2 * tm_eff * D * xbytes           # x + out, double-buffered
        + tm_eff * F * (4 + wbytes)             # hidden slab (f32 acc + cast copy)
        + (4 << 20)                             # margin for compiler temporaries
    )
    use_resident = (not force_chunked) and resident_bytes <= vmem_budget

    # --- token padding (padded rows give finite LN output, sliced off) ------
    x2d = tgt.reshape(N, D)
    if n_pad != N:
        x2d = jnp.pad(x2d, ((0, n_pad - N), (0, 0)))

    b2_2d = b2.reshape(1, D)
    g_2d = gamma.reshape(1, D)
    beta_2d = beta.reshape(1, D)
    flops = 4 * N * D * F

    def wspec(shape, index_map, single_buffer):
        if single_buffer:
            return pl.BlockSpec(shape, index_map, pipeline_mode=pl.Buffered(1))
        return pl.BlockSpec(shape, index_map)

    if use_resident:
        b1_2d = b1.reshape(1, F)
        cost = pl.CostEstimate(
            flops=flops, transcendentals=0,
            bytes_accessed=2 * n_pad * D * xbytes + 2 * D * F * wbytes
            + (F + 3 * D) * 4)

        def run(single_buffer):
            grid_spec = pltpu.PrefetchScalarGridSpec(
                num_scalar_prefetch=0,
                grid=(n_row_tiles,),
                in_specs=[
                    pl.BlockSpec((tm_eff, D), lambda i: (i, 0)),           # x tile
                    wspec((D, F), lambda i: (0, 0), single_buffer),        # W1 (resident)
                    wspec((1, F), lambda i: (0, 0), single_buffer),        # b1
                    wspec((F, D), lambda i: (0, 0), single_buffer),        # W2 (resident)
                    wspec((1, D), lambda i: (0, 0), single_buffer),        # b2
                    wspec((1, D), lambda i: (0, 0), single_buffer),        # gamma
                    wspec((1, D), lambda i: (0, 0), single_buffer),        # beta
                ],
                out_specs=pl.BlockSpec((tm_eff, D), lambda i: (i, 0)),
            )
            return pl.pallas_call(
                functools.partial(_ffn_kernel_resident, eps=eps),
                out_shape=jax.ShapeDtypeStruct((n_pad, D), tgt.dtype),
                grid_spec=grid_spec,
                compiler_params=pltpu.CompilerParams(
                    dimension_semantics=("parallel",),
                    vmem_limit_bytes=vmem_budget),
                cost_estimate=cost,
            )(x2d, w1, b1_2d, w2, b2_2d, g_2d, beta_2d)

        try:
            out2d = run(True)           # single-buffer constant blocks
        except Exception:
            out2d = run(False)          # JAX build without Buffered(1) support
    else:
        # ---------------- F-chunked fallback (accumulator over F axis) ------
        tf_eff = min(tf, F)
        if tf_eff < F:
            cand = (tf_eff // 128) * 128
            while cand >= 128 and F % cand:
                cand -= 128
            tf_eff = cand if cand >= 128 else _round_up(tf_eff, 128)
        f_pad = _round_up(F, tf_eff)
        if f_pad != F:
            # TODO(synk): for very large F, pad the weights once outside the
            # per-call forward instead of per call.
            w1 = jnp.pad(w1, ((0, 0), (0, f_pad - F)))
            b1 = jnp.pad(b1, ((0, f_pad - F),))
            w2 = jnp.pad(w2, ((0, f_pad - F), (0, 0)))
        b1_2d = b1.reshape(1, f_pad)
        n_f = f_pad // tf_eff

        cost = pl.CostEstimate(
            flops=flops, transcendentals=0,
            bytes_accessed=2 * n_pad * D * xbytes
            + n_row_tiles * (2 * D * f_pad * wbytes + f_pad * 4) + 3 * D * 4)

        def run(single_buffer):
            grid_spec = pltpu.PrefetchScalarGridSpec(
                num_scalar_prefetch=0,
                grid=(n_row_tiles, n_f),
                in_specs=[
                    pl.BlockSpec((tm_eff, D), lambda i, f: (i, 0)),        # x (resident over f)
                    pl.BlockSpec((D, tf_eff), lambda i, f: (0, f)),        # W1 chunk
                    pl.BlockSpec((1, tf_eff), lambda i, f: (0, f)),        # b1 chunk
                    pl.BlockSpec((tf_eff, D), lambda i, f: (f, 0)),        # W2 chunk
                    wspec((1, D), lambda i, f: (0, 0), single_buffer),     # b2
                    wspec((1, D), lambda i, f: (0, 0), single_buffer),     # gamma
                    wspec((1, D), lambda i, f: (0, 0), single_buffer),     # beta
                ],
                out_specs=pl.BlockSpec((tm_eff, D), lambda i, f: (i, 0)),
                scratch_shapes=[pltpu.VMEM((tm_eff, D), jnp.float32)],     # f32 accumulator
            )
            return pl.pallas_call(
                functools.partial(_ffn_kernel_chunked, eps=eps),
                out_shape=jax.ShapeDtypeStruct((n_pad, D), tgt.dtype),
                grid_spec=grid_spec,
                compiler_params=pltpu.CompilerParams(
                    dimension_semantics=("parallel", "arbitrary"),
                    vmem_limit_bytes=vmem_budget),
                cost_estimate=cost,
            )(x2d, w1, b1_2d, w2, b2_2d, g_2d, beta_2d)

        try:
            out2d = run(True)
        except Exception:
            out2d = run(False)

    if n_pad != N:
        out2d = out2d[:N]
    return out2d.reshape(T, B, D)


# ---------------------------------------------------------------------------
# Reference / test harness
# ---------------------------------------------------------------------------

def _xavier_uniform(key, fan_in, fan_out, dtype=jnp.float32):
    limit = (6.0 / (fan_in + fan_out)) ** 0.5
    return jax.random.uniform(key, (fan_in, fan_out), dtype, -limit, limit)


def _reference(tgt, w1, b1, w2, b2, gamma, beta, eps=1e-5):
    h = jnp.maximum(tgt @ w1 + b1, 0.0)
    t2 = h @ w2 + b2
    y = tgt + t2
    mean = jnp.mean(y, axis=-1, keepdims=True)
    var = jnp.mean((y - mean) ** 2, axis=-1, keepdims=True)
    return (y - mean) / jnp.sqrt(var + eps) * gamma + beta


def _make_params(key, D, Fdim):
    k_w1, k_b1, k_w2, k_b2, k_g, k_be = jax.random.split(key, 6)
    w1 = _xavier_uniform(k_w1, D, Fdim)                       # linear1 weight (in, out)
    b1 = jax.random.uniform(k_b1, (Fdim,), jnp.float32,
                            -1.0 / D ** 0.5, 1.0 / D ** 0.5)
    w2 = _xavier_uniform(k_w2, Fdim, D)                       # linear2 weight (in, out)
    b2 = jax.random.uniform(k_b2, (D,), jnp.float32,
                            -1.0 / Fdim ** 0.5, 1.0 / Fdim ** 0.5)
    gamma = 1.0 + 0.1 * jax.random.normal(k_g, (D,), jnp.float32)
    beta = 0.1 * jax.random.normal(k_be, (D,), jnp.float32)
    return w1, b1, w2, b2, gamma, beta


if __name__ == "__main__":
    key = jax.random.PRNGKey(0)
    k_a, k_b, k_c, k_p1, k_p2, k_p3 = jax.random.split(key, 6)

    # --- test 1: resident-weight fast path (small module-consistent shapes) ---
    T, B, D, Fdim = 8, 2, 32, 64
    tgt = jax.random.normal(k_a, (T, B, D), jnp.float32)
    params = _make_params(k_p1, D, Fdim)
    out = jax.block_until_ready(ffn_layer(tgt, *params))
    ref = _reference(tgt, *params)
    assert out.shape == tgt.shape
    assert jnp.allclose(out, ref, atol=2e-5, rtol=1e-5), "mismatch vs reference (test 1)"

    # --- test 2: token remainder / padding path (N not a tile multiple) -------
    T2, B2, D2, F2 = 7, 3, 32, 96
    tgt2 = jax.random.normal(k_b, (T2, B2, D2), jnp.float32)
    params2 = _make_params(k_p2, D2, F2)
    out2 = jax.block_until_ready(ffn_layer(tgt2, *params2))
    ref2 = _reference(tgt2, *params2)
    assert out2.shape == tgt2.shape
    assert jnp.allclose(out2, ref2, atol=2e-5, rtol=1e-5), "mismatch vs reference (test 2)"

    # --- test 3: F-chunked fallback (accumulator path), forced ----------------
    T3, B3, D3, F3 = 8, 2, 32, 256
    tgt3 = jax.random.normal(k_c, (T3, B3, D3), jnp.float32)
    params3 = _make_params(k_p3, D3, F3)
    out3 = jax.block_until_ready(
        ffn_layer(tgt3, *params3, tf=128, force_chunked=True))
    ref3 = _reference(tgt3, *params3)
    assert out3.shape == tgt3.shape
    assert jnp.allclose(out3, ref3, atol=2e-5, rtol=1e-5), "mismatch vs reference (test 3)"

    print("KERNEL_OK")
</pallas_src>

<mosaic_0001>
module attributes {stable_mosaic.version = 11 : i64} {
  func.func @_ffn_kernel_resident(%arg0: i32, %arg1: memref<8x32xf32, #tpu.memory_space<vmem>>, %arg2: memref<32x64xf32, #tpu.memory_space<vmem>>, %arg3: memref<1x64xf32, #tpu.memory_space<vmem>>, %arg4: memref<64x32xf32, #tpu.memory_space<vmem>>, %arg5: memref<1x32xf32, #tpu.memory_space<vmem>>, %arg6: memref<1x32xf32, #tpu.memory_space<vmem>>, %arg7: memref<1x32xf32, #tpu.memory_space<vmem>>, %arg8: memref<8x32xf32, #tpu.memory_space<vmem>>) attributes {dimension_semantics = [#tpu.dimension_semantics<parallel>], iteration_bounds = array<i64: 2>, scalar_prefetch = 0 : i64, scratch_operands = 0 : i64, tpu.core_type = #tpu.core_type<tc>, window_params = [{transform_indices = @transform_0, window_bounds = array<i64: 8, 32>}, {pipeline_mode = #tpu.pipeline_mode<synchronous>, transform_indices = @transform_1, window_bounds = array<i64: 32, 64>}, {pipeline_mode = #tpu.pipeline_mode<synchronous>, transform_indices = @transform_2, window_bounds = array<i64: 1, 64>}, {pipeline_mode = #tpu.pipeline_mode<synchronous>, transform_indices = @transform_3, window_bounds = array<i64: 64, 32>}, {pipeline_mode = #tpu.pipeline_mode<synchronous>, transform_indices = @transform_4, window_bounds = array<i64: 1, 32>}, {pipeline_mode = #tpu.pipeline_mode<synchronous>, transform_indices = @transform_5, window_bounds = array<i64: 1, 32>}, {pipeline_mode = #tpu.pipeline_mode<synchronous>, transform_indices = @transform_6, window_bounds = array<i64: 1, 32>}, {transform_indices = @transform_7, window_bounds = array<i64: 8, 32>}]} {
    %c0 = arith.constant 0 : index
    %c0_0 = arith.constant 0 : index
    %0 = vector.load %arg1[%c0, %c0_0] : memref<8x32xf32, #tpu.memory_space<vmem>>, vector<8x32xf32>
    %c0_1 = arith.constant 0 : index
    %c0_2 = arith.constant 0 : index
    %1 = vector.load %arg2[%c0_1, %c0_2] : memref<32x64xf32, #tpu.memory_space<vmem>>, vector<32x64xf32>
    %cst = arith.constant dense<0.000000e+00> : vector<8x64xf32>
    %2 = tpu.matmul %0, %1, %cst {dimension_numbers = #tpu.dot_dimension_numbers<[1], [0], [0], [1], [0, 0, 1, 1], [], []>} : vector<8x32xf32>, vector<32x64xf32>, vector<8x64xf32> -> vector<8x64xf32>
    %c0_3 = arith.constant 0 : index
    %c0_4 = arith.constant 0 : index
    %3 = vector.load %arg3[%c0_3, %c0_4] : memref<1x64xf32, #tpu.memory_space<vmem>>, vector<1x64xf32>
    %4 = vector.broadcast %3 : vector<1x64xf32> to vector<8x64xf32>
    %5 = arith.addf %2, %4 : vector<8x64xf32>
    %cst_5 = arith.constant 0.000000e+00 : f32
    %6 = vector.broadcast %cst_5 : f32 to vector<8x64xf32>
    %7 = arith.maximumf %5, %6 : vector<8x64xf32>
    %c0_6 = arith.constant 0 : index
    %c0_7 = arith.constant 0 : index
    %8 = vector.load %arg4[%c0_6, %c0_7] : memref<64x32xf32, #tpu.memory_space<vmem>>, vector<64x32xf32>
    %cst_8 = arith.constant dense<0.000000e+00> : vector<8x32xf32>
    %9 = tpu.matmul %7, %8, %cst_8 {dimension_numbers = #tpu.dot_dimension_numbers<[1], [0], [0], [1], [0, 0, 1, 1], [], []>} : vector<8x64xf32>, vector<64x32xf32>, vector<8x32xf32> -> vector<8x32xf32>
    %10 = arith.addf %0, %9 : vector<8x32xf32>
    %c0_9 = arith.constant 0 : index
    %c0_10 = arith.constant 0 : index
    %11 = vector.load %arg5[%c0_9, %c0_10] : memref<1x32xf32, #tpu.memory_space<vmem>>, vector<1x32xf32>
    %12 = vector.broadcast %11 : vector<1x32xf32> to vector<8x32xf32>
    %13 = arith.addf %10, %12 : vector<8x32xf32>
    %cst_11 = arith.constant dense<0.000000e+00> : vector<8xf32>
    %14 = vector.multi_reduction <add>, %13, %cst_11 [1] : vector<8x32xf32> to vector<8xf32>
    %15 = vector.shape_cast %14 : vector<8xf32> to vector<8x1xf32>
    %cst_12 = arith.constant 3.200000e+01 : f32
    %16 = vector.broadcast %cst_12 : f32 to vector<8x1xf32>
    %17 = arith.divf %15, %16 : vector<8x1xf32>
    %18 = vector.broadcast %17 : vector<8x1xf32> to vector<8x32xf32>
    %19 = arith.subf %13, %18 : vector<8x32xf32>
    %20 = arith.mulf %19, %19 : vector<8x32xf32>
    %cst_13 = arith.constant dense<0.000000e+00> : vector<8xf32>
    %21 = vector.multi_reduction <add>, %20, %cst_13 [1] : vector<8x32xf32> to vector<8xf32>
    %22 = vector.shape_cast %21 : vector<8xf32> to vector<8x1xf32>
    %cst_14 = arith.constant 3.200000e+01 : f32
    %23 = vector.broadcast %cst_14 : f32 to vector<8x1xf32>
    %24 = arith.divf %22, %23 : vector<8x1xf32>
    %cst_15 = arith.constant 9.99999974E-6 : f32
    %25 = vector.broadcast %cst_15 : f32 to vector<8x1xf32>
    %26 = arith.addf %24, %25 : vector<8x1xf32>
    %27 = math.rsqrt %26 : vector<8x1xf32>
    %28 = vector.broadcast %27 : vector<8x1xf32> to vector<8x32xf32>
    %29 = arith.mulf %19, %28 : vector<8x32xf32>
    %c0_16 = arith.constant 0 : index
    %c0_17 = arith.constant 0 : index
    %30 = vector.load %arg6[%c0_16, %c0_17] : memref<1x32xf32, #tpu.memory_space<vmem>>, vector<1x32xf32>
    %31 = vector.broadcast %30 : vector<1x32xf32> to vector<8x32xf32>
    %32 = arith.mulf %29, %31 : vector<8x32xf32>
    %c0_18 = arith.constant 0 : index
    %c0_19 = arith.constant 0 : index
    %33 = vector.load %arg7[%c0_18, %c0_19] : memref<1x32xf32, #tpu.memory_space<vmem>>, vector<1x32xf32>
    %34 = vector.broadcast %33 : vector<1x32xf32> to vector<8x32xf32>
    %35 = arith.addf %32, %34 : vector<8x32xf32>
    %c0_20 = arith.constant 0 : index
    %c0_21 = arith.constant 0 : index
    %36 = vector.load %arg8[%c0_20, %c0_21] : memref<8x32xf32, #tpu.memory_space<vmem>>, vector<8x32xf32>
    tpu.vector_store %arg8[%c0_20, %c0_21], %35 {strides = array<i32>} : memref<8x32xf32, #tpu.memory_space<vmem>>, vector<8x32xf32>,
    return
  }
  func.func @transform_0(%arg0: i32) -> (i32, i32) {
    %c0_i32 = arith.constant 0 : i32
    %c0_i32_0 = arith.constant 0 : i32
    return %arg0, %c0_i32 : i32, i32
  }
  func.func @transform_1(%arg0: i32) -> (i32, i32) {
    %c0_i32 = arith.constant 0 : i32
    %c0_i32_0 = arith.constant 0 : i32
    %c0_i32_1 = arith.constant 0 : i32
    return %c0_i32, %c0_i32_0 : i32, i32
  }
  func.func @transform_2(%arg0: i32) -> (i32, i32) {
    %c0_i32 = arith.constant 0 : i32
    %c0_i32_0 = arith.constant 0 : i32
    %c0_i32_1 = arith.constant 0 : i32
    return %c0_i32, %c0_i32_0 : i32, i32
  }
  func.func @transform_3(%arg0: i32) -> (i32, i32) {
    %c0_i32 = arith.constant 0 : i32
    %c0_i32_0 = arith.constant 0 : i32
    %c0_i32_1 = arith.constant 0 : i32
    return %c0_i32, %c0_i32_0 : i32, i32
  }
  func.func @transform_4(%arg0: i32) -> (i32, i32) {
    %c0_i32 = arith.constant 0 : i32
    %c0_i32_0 = arith.constant 0 : i32
    %c0_i32_1 = arith.constant 0 : i32
    return %c0_i32, %c0_i32_0 : i32, i32
  }
  func.func @transform_5(%arg0: i32) -> (i32, i32) {
    %c0_i32 = arith.constant 0 : i32
    %c0_i32_0 = arith.constant 0 : i32
    %c0_i32_1 = arith.constant 0 : i32
    return %c0_i32, %c0_i32_0 : i32, i32
  }
  func.func @transform_6(%arg0: i32) -> (i32, i32) {
    %c0_i32 = arith.constant 0 : i32
    %c0_i32_0 = arith.constant 0 : i32
    %c0_i32_1 = arith.constant 0 : i32
    return %c0_i32, %c0_i32_0 : i32, i32
  }
  func.func @transform_7(%arg0: i32) -> (i32, i32) {
    %c0_i32 = arith.constant 0 : i32
    %c0_i32_0 = arith.constant 0 : i32
    return %arg0, %c0_i32 : i32, i32
  }
}

module attributes {stable_mosaic.version = 11 : i64} {
  func.func @_ffn_kernel_resident(%arg0: i32, %arg1: memref<8x32xf32, #tpu.memory_space<vmem>>, %arg2: memref<32x64xf32, #tpu.memory_space<vmem>>, %arg3: memref<1x64xf32, #tpu.memory_space<vmem>>, %arg4: memref<64x32xf32, #tpu.memory_space<vmem>>, %arg5: memref<1x32xf32, #tpu.memory_space<vmem>>, %arg6: memref<1x32xf32, #tpu.memory_space<vmem>>, %arg7: memref<1x32xf32, #tpu.memory_space<vmem>>, %arg8: memref<8x32xf32, #tpu.memory_space<vmem>>) attributes {dimension_semantics = [#tpu.dimension_semantics<parallel>], iteration_bounds = array<i64: 2>, scalar_prefetch = 0 : i64, scratch_operands = 0 : i64, tpu.core_type = #tpu.core_type<tc>, window_params = [{transform_indices = @transform_0, window_bounds = array<i64: 8, 32>}, {pipeline_mode = #tpu.pipeline_mode<synchronous>, transform_indices = @transform_1, window_bounds = array<i64: 32, 64>}, {pipeline_mode = #tpu.pipeline_mode<synchronous>, transform_indices = @transform_2, window_bounds = array<i64: 1, 64>}, {pipeline_mode = #tpu.pipeline_mode<synchronous>, transform_indices = @transform_3, window_bounds = array<i64: 64, 32>}, {pipeline_mode = #tpu.pipeline_mode<synchronous>, transform_indices = @transform_4, window_bounds = array<i64: 1, 32>}, {pipeline_mode = #tpu.pipeline_mode<synchronous>, transform_indices = @transform_5, window_bounds = array<i64: 1, 32>}, {pipeline_mode = #tpu.pipeline_mode<synchronous>, transform_indices = @transform_6, window_bounds = array<i64: 1, 32>}, {transform_indices = @transform_7, window_bounds = array<i64: 8, 32>}]} {
    %c0 = arith.constant 0 : index
    %c0_0 = arith.constant 0 : index
    %0 = vector.load %arg1[%c0, %c0_0] : memref<8x32xf32, #tpu.memory_space<vmem>>, vector<8x32xf32>
    %c0_1 = arith.constant 0 : index
    %c0_2 = arith.constant 0 : index
    %1 = vector.load %arg2[%c0_1, %c0_2] : memref<32x64xf32, #tpu.memory_space<vmem>>, vector<32x64xf32>
    %cst = arith.constant dense<0.000000e+00> : vector<8x64xf32>
    %2 = tpu.matmul %0, %1, %cst {dimension_numbers = #tpu.dot_dimension_numbers<[1], [0], [0], [1], [0, 0, 1, 1], [], []>} : vector<8x32xf32>, vector<32x64xf32>, vector<8x64xf32> -> vector<8x64xf32>
    %c0_3 = arith.constant 0 : index
    %c0_4 = arith.constant 0 : index
    %3 = vector.load %arg3[%c0_3, %c0_4] : memref<1x64xf32, #tpu.memory_space<vmem>>, vector<1x64xf32>
    %4 = vector.broadcast %3 : vector<1x64xf32> to vector<8x64xf32>
    %5 = arith.addf %2, %4 : vector<8x64xf32>
    %cst_5 = arith.constant 0.000000e+00 : f32
    %6 = vector.broadcast %cst_5 : f32 to vector<8x64xf32>
    %7 = arith.maximumf %5, %6 : vector<8x64xf32>
    %c0_6 = arith.constant 0 : index
    %c0_7 = arith.constant 0 : index
    %8 = vector.load %arg4[%c0_6, %c0_7] : memref<64x32xf32, #tpu.memory_space<vmem>>, vector<64x32xf32>
    %cst_8 = arith.constant dense<0.000000e+00> : vector<8x32xf32>
    %9 = tpu.matmul %7, %8, %cst_8 {dimension_numbers = #tpu.dot_dimension_numbers<[1], [0], [0], [1], [0, 0, 1, 1], [], []>} : vector<8x64xf32>, vector<64x32xf32>, vector<8x32xf32> -> vector<8x32xf32>
    %10 = arith.addf %0, %9 : vector<8x32xf32>
    %c0_9 = arith.constant 0 : index
    %c0_10 = arith.constant 0 : index
    %11 = vector.load %arg5[%c0_9, %c0_10] : memref<1x32xf32, #tpu.memory_space<vmem>>, vector<1x32xf32>
    %12 = vector.broadcast %11 : vector<1x32xf32> to vector<8x32xf32>
    %13 = arith.addf %10, %12 : vector<8x32xf32>
    %cst_11 = arith.constant dense<0.000000e+00> : vector<8xf32>
    %14 = vector.multi_reduction <add>, %13, %cst_11 [1] : vector<8x32xf32> to vector<8xf32>
    %15 = vector.shape_cast %14 : vector<8xf32> to vector<8x1xf32>
    %cst_12 = arith.constant 3.200000e+01 : f32
    %16 = vector.broadcast %cst_12 : f32 to vector<8x1xf32>
    %17 = arith.divf %15, %16 : vector<8x1xf32>
    %18 = vector.broadcast %17 : vector<8x1xf32> to vector<8x32xf32>
    %19 = arith.subf %13, %18 : vector<8x32xf32>
    %20 = arith.mulf %19, %19 : vector<8x32xf32>
    %cst_13 = arith.constant dense<0.000000e+00> : vector<8xf32>
    %21 = vector.multi_reduction <add>, %20, %cst_13 [1] : vector<8x32xf32> to vector<8xf32>
    %22 = vector.shape_cast %21 : vector<8xf32> to vector<8x1xf32>
    %cst_14 = arith.constant 3.200000e+01 : f32
    %23 = vector.broadcast %cst_14 : f32 to vector<8x1xf32>
    %24 = arith.divf %22, %23 : vector<8x1xf32>
    %cst_15 = arith.constant 9.99999974E-6 : f32
    %25 = vector.broadcast %cst_15 : f32 to vector<8x1xf32>
    %26 = arith.addf %24, %25 : vector<8x1xf32>
    %27 = math.rsqrt %26 : vector<8x1xf32>
    %28 = vector.broadcast %27 : vector<8x1xf32> to vector<8x32xf32>
    %29 = arith.mulf %19, %28 : vector<8x32xf32>
    %c0_16 = arith.constant 0 : index
    %c0_17 = arith.constant 0 : index
    %30 = vector.load %arg6[%c0_16, %c0_17] : memref<1x32xf32, #tpu.memory_space<vmem>>, vector<1x32xf32>
    %31 = vector.broadcast %30 : vector<1x32xf32> to vector<8x32xf32>
    %32 = arith.mulf %29, %31 : vector<8x32xf32>
    %c0_18 = arith.constant 0 : index
    %c0_19 = arith.constant 0 : index
    %33 = vector.load %arg7[%c0_18, %c0_19] : memref<1x32xf32, #tpu.memory_space<vmem>>, vector<1x32xf32>
    %34 = vector.broadcast %33 : vector<1x32xf32> to vector<8x32xf32>
    %35 = arith.addf %32, %34 : vector<8x32xf32>
    %c0_20 = arith.constant 0 : index
    %c0_21 = arith.constant 0 : index
    %36 = vector.load %arg8[%c0_20, %c0_21] : memref<8x32xf32, #tpu.memory_space<vmem>>, vector<8x32xf32>
    tpu.vector_store %arg8[%c0_20, %c0_21], %35 {strides = array<i32>} : memref<8x32xf32, #tpu.memory_space<vmem>>, vector<8x32xf32>,
    return
  }
  func.func @transform_0(%arg0: i32) -> (i32, i32) {
    %c0_i32 = arith.constant 0 : i32
    %c0_i32_0 = arith.constant 0 : i32
    return %arg0, %c0_i32 : i32, i32
  }
  func.func @transform_1(%arg0: i32) -> (i32, i32) {
    %c0_i32 = arith.constant 0 : i32
    %c0_i32_0 = arith.constant 0 : i32
    %c0_i32_1 = arith.constant 0 : i32
    return %c0_i32, %c0_i32_0 : i32, i32
  }
  func.func @transform_2(%arg0: i32) -> (i32, i32) {
    %c0_i32 = arith.constant 0 : i32
    %c0_i32_0 = arith.constant 0 : i32
    %c0_i32_1 = arith.constant 0 : i32
    return %c0_i32, %c0_i32_0 : i32, i32
  }
  func.func @transform_3(%arg0: i32) -> (i32, i32) {
    %c0_i32 = arith.constant 0 : i32
    %c0_i32_0 = arith.constant 0 : i32
    %c0_i32_1 = arith.constant 0 : i32
    return %c0_i32, %c0_i32_0 : i32, i32
  }
  func.func @transform_4(%arg0: i32) -> (i32, i32) {
    %c0_i32 = arith.constant 0 : i32
    %c0_i32_0 = arith.constant 0 : i32
    %c0_i32_1 = arith.constant 0 : i32
    return %c0_i32, %c0_i32_0 : i32, i32
  }
  func.func @transform_5(%arg0: i32) -> (i32, i32) {
    %c0_i32 = arith.constant 0 : i32
    %c0_i32_0 = arith.constant 0 : i32
    %c0_i32_1 = arith.constant 0 : i32
    return %c0_i32, %c0_i32_0 : i32, i32
  }
  func.func @transform_6(%arg0: i32) -> (i32, i32) {
    %c0_i32 = arith.constant 0 : i32
    %c0_i32_0 = arith.constant 0 : i32
    %c0_i32_1 = arith.constant 0 : i32
    return %c0_i32, %c0_i32_0 : i32, i32
  }
  func.func @transform_7(%arg0: i32) -> (i32, i32) {
    %c0_i32 = arith.constant 0 : i32
    %c0_i32_0 = arith.constant 0 : i32
    return %arg0, %c0_i32 : i32, i32
  }
}

</mosaic_0001>

<bundles_post_ra>
// kernel: tpu_custom_call.1
= control target key start
LH: loop header
LB: loop body
LE: loop exit
PB: predicated region body
PF: predicated region fallthrough
CT: control target
= control target key end

     0   :  { %12 = vsyncpa [#allocation3], 0  ;;  %s938_s0 = inlined_call_operand.vmem [shape: f32[16,32], index: 0, kind: input, shape index: {}]   ;;  %s939_s1 = inlined_call_operand.vmem [shape: f32[32,64], index: 1, kind: input, shape index: {}]   ;;  %s940_s2 = inlined_call_operand.vmem [shape: f32[1,64], index: 2, kind: input, shape index: {}]   ;;  %s941_s3 = inlined_call_operand.vmem [shape: f32[64,32], index: 3, kind: input, shape index: {}]   ;;  %s942_s4 = inlined_call_operand.vmem [shape: f32[1,32], index: 4, kind: input, shape index: {}]   ;;  %s943_s5 = inlined_call_operand.vmem [shape: f32[1,32], index: 5, kind: input, shape index: {}]   ;;  %s944_s6 = inlined_call_operand.vmem [shape: f32[1,32], index: 6, kind: input, shape index: {}]   ;;  %s945_s7 = inlined_call_operand.hbm [shape: f32[16,32], index: 7, kind: output, shape index: {}]  }
   0x1   :  { %14 = vsyncpa [#allocation3 + $0x1], 0  ;;  %s786_s24 = smov 0   ;;  %s788_s25 = smov 0  }
   0x2   :  { %s790_s26 = smov 0   ;;  %s792_s27 = smov 0  }
   0x3 LB: > { %s807_s28 = sadd.s32 4294967295, %s740_s27   ;;  %s556_s29 = sadd.s32 4294967294, %s740_s27   ;;  %s740_s27 = sphi %s792_s27, %s951_s27   ;;  %s736_s26 = sphi %s790_s26, %s950_s26   ;;  %s732_s25 = sphi %s788_s25, %s949_s25   ;;  %s728_s24 = sphi %s786_s24, %s948_s24  }
   0x4   : > { %s811_s30 = sadd.s32 1, %s740_s27   ;;  %s179_s8 = sadd.s32 1, %s736_s26 }
   0x5   : > { %s176_s9 = ssub.s32 %s740_s27, %s811_s30  ;;  %p189_p0 = scmp.ne.s32.totalorder %s736_s26, %s732_s25 }
   0x6   : > { %p177_p1 = scmp.eq.s32.totalorder %s176_s9, 0  ;;  %p190_p2 = scmp.eq.s32.totalorder %s807_s28, 1 }
   0x7   : > { %p195_p3 = scmp.ne.s32.totalorder %s732_s25, %s728_s24  ;;  %p196_p4 = scmp.eq.s32.totalorder %s556_s29, 1 }
   0x8   : > { %s822_s10 = scalar_select %p177_p1, %s736_s26, %s179_s8  }
   0x9   : > { %p824_p5 = por %p190_p2, %p189_p0  ;;  %p828_p6 = por %p196_p4, %p195_p3 }
   0xa   : > { %p559_p7 = scmp.ge.s32.totalorder %s740_s27, 1  ;;  %p239_p8 = scmp.lt.s32.totalorder %s740_s27, 3 }
   0xc   : > { %p240_p9 = pnand %p559_p7, %p239_p8 }
   0xd   : > { %v275_v0 = vld [vmem:[%s939_s1] sm:$0xff] (!%p240_p9)  ;;  %v276_v1 = vld [vmem:[%s939_s1 + $0x8] sm:$0xff] (!%p240_p9)  ;;  %v277_v2 = vld [vmem:[%s939_s1 + $0x10] sm:$0xff] (!%p240_p9)  ;;  %v742_v3 = vmov (!%p240_p9), 0.0|0.0   ;;  %vm743_vm0 = vmmov (!%p240_p9), 0   ;;  %v744_v6 = vmov (!%p240_p9), 0.0  }
   0xe   : > { %243 = sbr.rel (%p240_p9) target bundleno = 785 (0x311), region = 48  ;;  %616 = vmatprep.subr.bf16.mxu0 (!%p240_p9), %v742_v3  ;;  %v617_v4 = vpack.c.bf16 (!%p240_p9), %v276_v1, %v275_v0  ;;  %v278_v5 = vld [vmem:[%s939_s1 + $0x18] sm:$0xff] (!%p240_p9)  ;;  %594 = vmatprep.mubr.msk.f32.mxu0 (!%p240_p9), %vm743_vm0, %v744_v6  ;;  %p270_p10 = scmp.lt.s32.totalorder (!%p240_p9), %s807_s28, 1  ;;  %v361_v7 = vld [vmem:[%s941_s3] sm:$0xff] (!%p240_p9)  ;;  %v362_v8 = vld [vmem:[%s941_s3 + $0x8] sm:$0xff] (!%p240_p9)  ;;  %vm286_vm1 = vcmask (!%p240_p9), 261120  }
   0xf   : > { %622 = vmatprep.subr.bf16.mxu1 (!%p240_p9), %v742_v3  ;;  %v623_v9 = vpack.c.bf16 (!%p240_p9), %v362_v8, %v361_v7  ;;  %v363_v10 = vld [vmem:[%s941_s3 + $0x10] sm:$0xff] (!%p240_p9)  ;;  %v364_v11 = vld [vmem:[%s941_s3 + $0x18] sm:$0xff] (!%p240_p9)  ;;  %613 = vmatprep.mubr.msk.f32.mxu1 (!%p240_p9), %vm743_vm0, %v744_v6  ;;  %v620_v12 = vpack.c.bf16 (!%p240_p9), %v278_v5, %v277_v2  ;;  %v365_v14 = vld [vmem:[%s941_s3 + $0x20] sm:$0xff] (!%p240_p9)  ;;  %vm369_vm2 = vcmask (!%p240_p9), 523264   ;;  %s267_s18 = sand.u32 (!%p240_p9), 1, %s732_s25   ;;  %s569_s29 = sshll.u32 (!%p240_p9), %s807_s28, 7 }
  0x10   : > { %618 = vmatpush3.bf16.msra.mxu0 (!%p240_p9), %v617_v4  ;;  %v626_v13 = vpack.c.bf16 (!%p240_p9), %v364_v11, %v363_v10  ;;  %v366_v15 = vld [vmem:[%s941_s3 + $0x28] sm:$0xff] (!%p240_p9)  ;;  %v367_v18 = vld [vmem:[%s941_s3 + $0x30] sm:$0xff] (!%p240_p9)  ;;  %v368_v19 = vld [vmem:[%s941_s3 + $0x38] sm:$0xff] (!%p240_p9)  ;;  %s560_s19 = sshll.u32 (!%p240_p9), %s267_s18, 3 }
  0x11   : > { %619 = vmatprep.subr.bf16.mxu0 (!%p240_p9), %v742_v3  ;;  %624 = vmatpush3.bf16.msra.mxu1 (!%p240_p9), %v623_v9  ;;  %v629_v17 = vpack.c.bf16 (!%p240_p9), %v366_v15, %v365_v14  ;;  %v632_v20 = vpack.c.bf16 (!%p240_p9), %v368_v19, %v367_v18  ;;  %v562_v21 = vld [vmem:[%s940_s2] ss:$0 sm:$0xff] (!%p240_p9)  ;;  %s269_s8 = scalar_lea.vmem (!%p240_p9), [#allocation2], %s560_s19 }
  0x12   : > { %625 = vmatprep.subr.bf16.mxu1 (!%p240_p9), %v742_v3  ;;  %v565_v27 = vld [vmem:[%s942_s4] ss:$0 sm:$0xff] (!%p240_p9)  ;;  %s497_s9 = sshll.u32 (!%p240_p9), %s269_s8, 4  ;;  %s897_s9 = int_to_ptr.vmem [resolvable:$true] %s497_s9 }
  0x13   : > { %v566_v41 = vld [vmem:[%s943_s5] ss:$0 sm:$0xff] (!%p240_p9)  ;;  %s678_s17 = scalar_lea.vmem (!%p240_p9), %s897_s9, 128 }
  0x14   : > { %621 = vmatpush3.bf16.msra.mxu0 (!%p240_p9), %v620_v12  ;;  %v567_v43 = vld [vmem:[%s944_s6] ss:$0 sm:$0xff] (!%p240_p9)  ;;  %p679_p11 = scmp.ne.s32.totalorder (!%p240_p9), %s897_s9, %s678_s17 }
  0x15   : > { %s271_s15 = scalar_select %p270_p10, %s807_s28, 1  ;;  %627 = vmatpush3.bf16.msra.mxu1 %v626_v13 }
  0x16   : > { %628 = vmatprep.subr.bf16.mxu1 %v742_v3  ;;  %p680_p12 = pnand %p679_p11, %p824_p5  ;;  %s745_s28 = smov [#allocation2]  }
  0x17   : > { %s561_s16 = sshll.u32 %s271_s15, 3  ;;  %s895_s15 = scalar_lea.hbm %s945_s7, %s569_s29 }
  0x18   : > { %s273_s23 = scalar_lea.vmem %s938_s0, %s561_s16  ;;  %s484_s16 = scalar_lea.sflag [#allocation3], %s267_s18 }
  0x19   : > { %v274_v16 = vld [vmem:[%s273_s23] sm:$0xff]  ;;  %630 = vmatpush3.bf16.msra.mxu1 %v629_v17  ;;  %p681_p13 = pneg %p680_p12  ;;  %s682_s19 = sshll.u32 %s745_s28, 4  ;;  %s683_s19 = int_to_ptr.vmem [resolvable:$false] %s682_s19 }
  0x1a   : > { %595 = vmatmul.mubr.msk.f32.vlgmr.msra.gmra.mrb[0].mxu0 %vm286_vm1, %v274_v16  ;;  %631 = vmatprep.subr.bf16.mxu1 %v742_v3  ;;  %s684_s20 = scalar_lea.vmem %s683_s19, 256  ;;  %p685_p0 = scmp.lt.s32.totalorder %s897_s9, %s683_s19 }
  0x1b   : > { %p686_p1 = scmp.lt.s32.totalorder %s684_s20, %s678_s17 }
  0x1d   : > { %633 = vmatpush3.bf16.msra.mxu1 %v632_v20  ;;  %p687_p2 = por %p686_p1, %p685_p0 }
  0x1f   : > { %p688_p3 = pnand %p687_p2, %p681_p13 }
  0xed   : > { %v356_v22 = vpop.f32.mrb[0].mxu0 }
  0xee   : > { %v357_v23 = vadd.f32 %v562_v21, %v356_v22  ;;  %v596_v24 = vpop.f32.mrb[1].mxu0 }
  0xf0   : > { %v360_v25 = vmax.f32 %v357_v23, 0.0 }
  0xf2   : > { %614 = vmatmul.mubr.msk.f32.vlgmr.msra.gmra.mrb[0].mxu1 %vm369_vm2, %v360_v25 }
 0x1c5   : > { %v439_v26 = vpop.f32.mrb[0].mxu1 }
 0x1c6   : > { %v443_v28 = vadd.f32 %v439_v26, %v274_v16  ;;  %v615_v29 = vpop.f32.mrb[1].mxu1 }
 0x1c8   : > { %v451_v30 = vadd.f32 %v565_v27, %v443_v28 }
 0x1ca   : > { %v452_v31 = vsel %vm286_vm1, %v451_v30, 0.0 }
 0x1cb   : > { %453 = vadd.xlane.f32.xlu0 %v452_v31 }
 0x258   : > { %v454_v32 = vpop.xlane.xlu0 %453 }
 0x259   : > { %v456_v33 = vmul.f32 0.03125, %v454_v32 }
 0x25b   : > { %v457_v34 = vsub.f32 %v451_v30, %v456_v33 }
 0x25d   : > { %v458_v35 = vmul.f32 %v457_v34, %v457_v34 }
 0x25f   : > { %v459_v36 = vsel %vm286_vm1, %v458_v35, 0.0 }
 0x260   : > { %460 = vadd.xlane.f32.xlu0 %v459_v36 }
 0x2ed   : > { %v461_v37 = vpop.xlane.xlu0 %460 }
 0x2ee   : > { %v462_v38 = vmul.f32 0.03125, %v461_v37 }
 0x2f0   : > { %v463_v39 = vadd.f32 1e-05, %v462_v38 }
 0x2f2   : > { %676 = vrsqrt.f32 %v463_v39 }
 0x2fc   : > { %v677_v40 = vpop.eup %676 }
 0x2fd   : > { %v465_v42 = vmul.f32 %v677_v40, %v457_v34 }
 0x2ff   : > { %v473_v44 = vmul.f32 %v566_v41, %v465_v42 }
 0x301   : > { %v481_v45 = vadd.f32 %v567_v43, %v473_v44 }
 0x303   : > { %482 = vst.msk [vmem:[%s269_s8] sm:$0xff] %vm286_vm1, %v481_v45 }
 0x304   : > { %691 = shalt.err (!%p688_p3)
}
 0x305   : > { %s692_s18 = scalar_lea.hbm %s895_s15, 128  ;;  %s696_s23 = scalar_lea.hbm %s945_s7, 256 }
 0x306   : > { %p693_p4 = scmp.ne.s32.totalorder %s895_s15, %s692_s18  ;;  %p697_p9 = scmp.lt.u32.totalorder %s895_s15, %s945_s7 }
 0x307   : > { %p698_p10 = scmp.lt.u32.totalorder %s696_s23, %s692_s18  ;;  %p700_p12 = scmp.lt.u32.totalorder %s692_s18, %s895_s15 }
 0x308   : > { %p694_p7 = pnand %p693_p4, %p824_p5 }
 0x309   : > { %p699_p11 = por %p698_p10, %p697_p9 }
 0x30a   : > { %p695_p8 = pneg %p694_p7 }
 0x30b   : > { %p701_p13 = por %p700_p12, %p699_p11 }
 0x30d   : > { %p702_p0 = pnand %p701_p13, %p695_p8 }
 0x30f   : > { %705 = shalt.err (!%p702_p0)
}
 0x310   : > { %634 = dma.vmem_to_hbm [thread:$0]  (%p824_p5), %s897_s9, 128, %s895_s15, %s484_s16  }
 0x311 PF: > { %p640_p1 = scmp.ge.s32.totalorder %s740_s27, 2  ;;  %s509_s13 = sand.u32 1, %s728_s24  }
 0x312   : > { %s510_s14 = scalar_lea.sflag [#allocation3], %s509_s13 }
 0x313   : > { %p637_p2 = pnand %p640_p1, %p828_p6 }
 0x315   : > { %723 = dma.done.wait (!%p637_p2), %s510_s14, 128  }
 0x316   : > { %725 = vsyncadd (!%p637_p2), %s510_s14, 4294967168  ;;  %p17_p3 = scmp.ge.s32.totalorder %s811_s30, 4   ;;  %s948_s24 = smov %s732_s25 }
 0x317   : > { %s949_s25 = smov %s736_s26  ;;  %s950_s26 = smov %s822_s10 }
 0x318   : > { %s951_s27 = smov %s811_s30  ;;  %19 = sbr.rel (!%p17_p3) target bundleno = 3 (0x3), region = 83 }
 0x31f   :  { %515 = vsyncpa [#allocation3], 1 }
 0x320   :  { %517 = vsyncpa [#allocation3 + $0x1], 1 }

// kernel: tpu_custom_call.1
= control target key start
LH: loop header
LB: loop body
LE: loop exit
PB: predicated region body
PF: predicated region fallthrough
CT: control target
= control target key end

     0   :  { %12 = vsyncpa [#allocation3], 0  ;;  %s938_s0 = inlined_call_operand.vmem [shape: f32[16,32], index: 0, kind: input, shape index: {}]   ;;  %s939_s1 = inlined_call_operand.vmem [shape: f32[32,64], index: 1, kind: input, shape index: {}]   ;;  %s940_s2 = inlined_call_operand.vmem [shape: f32[1,64], index: 2, kind: input, shape index: {}]   ;;  %s941_s3 = inlined_call_operand.vmem [shape: f32[64,32], index: 3, kind: input, shape index: {}]   ;;  %s942_s4 = inlined_call_operand.vmem [shape: f32[1,32], index: 4, kind: input, shape index: {}]   ;;  %s943_s5 = inlined_call_operand.vmem [shape: f32[1,32], index: 5, kind: input, shape index: {}]   ;;  %s944_s6 = inlined_call_operand.vmem [shape: f32[1,32], index: 6, kind: input, shape index: {}]   ;;  %s945_s7 = inlined_call_operand.hbm [shape: f32[16,32], index: 7, kind: output, shape index: {}]  }
   0x1   :  { %14 = vsyncpa [#allocation3 + $0x1], 0  ;;  %s786_s24 = smov 0   ;;  %s788_s25 = smov 0  }
   0x2   :  { %s790_s26 = smov 0   ;;  %s792_s27 = smov 0  }
   0x3 LB: > { %s807_s28 = sadd.s32 4294967295, %s740_s27   ;;  %s556_s29 = sadd.s32 4294967294, %s740_s27   ;;  %s740_s27 = sphi %s792_s27, %s951_s27   ;;  %s736_s26 = sphi %s790_s26, %s950_s26   ;;  %s732_s25 = sphi %s788_s25, %s949_s25   ;;  %s728_s24 = sphi %s786_s24, %s948_s24  }
   0x4   : > { %s811_s30 = sadd.s32 1, %s740_s27   ;;  %s179_s8 = sadd.s32 1, %s736_s26 }
   0x5   : > { %s176_s9 = ssub.s32 %s740_s27, %s811_s30  ;;  %p189_p0 = scmp.ne.s32.totalorder %s736_s26, %s732_s25 }
   0x6   : > { %p177_p1 = scmp.eq.s32.totalorder %s176_s9, 0  ;;  %p190_p2 = scmp.eq.s32.totalorder %s807_s28, 1 }
   0x7   : > { %p195_p3 = scmp.ne.s32.totalorder %s732_s25, %s728_s24  ;;  %p196_p4 = scmp.eq.s32.totalorder %s556_s29, 1 }
   0x8   : > { %s822_s10 = scalar_select %p177_p1, %s736_s26, %s179_s8  }
   0x9   : > { %p824_p5 = por %p190_p2, %p189_p0  ;;  %p828_p6 = por %p196_p4, %p195_p3 }
   0xa   : > { %p559_p7 = scmp.ge.s32.totalorder %s740_s27, 1  ;;  %p239_p8 = scmp.lt.s32.totalorder %s740_s27, 3 }
   0xc   : > { %p240_p9 = pnand %p559_p7, %p239_p8 }
   0xd   : > { %v275_v0 = vld [vmem:[%s939_s1] sm:$0xff] (!%p240_p9)  ;;  %v276_v1 = vld [vmem:[%s939_s1 + $0x8] sm:$0xff] (!%p240_p9)  ;;  %v277_v2 = vld [vmem:[%s939_s1 + $0x10] sm:$0xff] (!%p240_p9)  ;;  %v742_v3 = vmov (!%p240_p9), 0.0|0.0   ;;  %vm743_vm0 = vmmov (!%p240_p9), 0   ;;  %v744_v6 = vmov (!%p240_p9), 0.0  }
   0xe   : > { %243 = sbr.rel (%p240_p9) target bundleno = 785 (0x311), region = 48  ;;  %616 = vmatprep.subr.bf16.mxu0 (!%p240_p9), %v742_v3  ;;  %v617_v4 = vpack.c.bf16 (!%p240_p9), %v276_v1, %v275_v0  ;;  %v278_v5 = vld [vmem:[%s939_s1 + $0x18] sm:$0xff] (!%p240_p9)  ;;  %594 = vmatprep.mubr.msk.f32.mxu0 (!%p240_p9), %vm743_vm0, %v744_v6  ;;  %p270_p10 = scmp.lt.s32.totalorder (!%p240_p9), %s807_s28, 1  ;;  %v361_v7 = vld [vmem:[%s941_s3] sm:$0xff] (!%p240_p9)  ;;  %v362_v8 = vld [vmem:[%s941_s3 + $0x8] sm:$0xff] (!%p240_p9)  ;;  %vm286_vm1 = vcmask (!%p240_p9), 261120  }
   0xf   : > { %622 = vmatprep.subr.bf16.mxu1 (!%p240_p9), %v742_v3  ;;  %v623_v9 = vpack.c.bf16 (!%p240_p9), %v362_v8, %v361_v7  ;;  %v363_v10 = vld [vmem:[%s941_s3 + $0x10] sm:$0xff] (!%p240_p9)  ;;  %v364_v11 = vld [vmem:[%s941_s3 + $0x18] sm:$0xff] (!%p240_p9)  ;;  %613 = vmatprep.mubr.msk.f32.mxu1 (!%p240_p9), %vm743_vm0, %v744_v6  ;;  %v620_v12 = vpack.c.bf16 (!%p240_p9), %v278_v5, %v277_v2  ;;  %v365_v14 = vld [vmem:[%s941_s3 + $0x20] sm:$0xff] (!%p240_p9)  ;;  %vm369_vm2 = vcmask (!%p240_p9), 523264   ;;  %s267_s18 = sand.u32 (!%p240_p9), 1, %s732_s25   ;;  %s569_s29 = sshll.u32 (!%p240_p9), %s807_s28, 7 }
  0x10   : > { %618 = vmatpush3.bf16.msra.mxu0 (!%p240_p9), %v617_v4  ;;  %v626_v13 = vpack.c.bf16 (!%p240_p9), %v364_v11, %v363_v10  ;;  %v366_v15 = vld [vmem:[%s941_s3 + $0x28] sm:$0xff] (!%p240_p9)  ;;  %v367_v18 = vld [vmem:[%s941_s3 + $0x30] sm:$0xff] (!%p240_p9)  ;;  %v368_v19 = vld [vmem:[%s941_s3 + $0x38] sm:$0xff] (!%p240_p9)  ;;  %s560_s19 = sshll.u32 (!%p240_p9), %s267_s18, 3 }
  0x11   : > { %619 = vmatprep.subr.bf16.mxu0 (!%p240_p9), %v742_v3  ;;  %624 = vmatpush3.bf16.msra.mxu1 (!%p240_p9), %v623_v9  ;;  %v629_v17 = vpack.c.bf16 (!%p240_p9), %v366_v15, %v365_v14  ;;  %v632_v20 = vpack.c.bf16 (!%p240_p9), %v368_v19, %v367_v18  ;;  %v562_v21 = vld [vmem:[%s940_s2] ss:$0 sm:$0xff] (!%p240_p9)  ;;  %s269_s8 = scalar_lea.vmem (!%p240_p9), [#allocation2], %s560_s19 }
  0x12   : > { %625 = vmatprep.subr.bf16.mxu1 (!%p240_p9), %v742_v3  ;;  %v565_v27 = vld [vmem:[%s942_s4] ss:$0 sm:$0xff] (!%p240_p9)  ;;  %s497_s9 = sshll.u32 (!%p240_p9), %s269_s8, 4  ;;  %s897_s9 = int_to_ptr.vmem [resolvable:$true] %s497_s9 }
  0x13   : > { %v566_v41 = vld [vmem:[%s943_s5] ss:$0 sm:$0xff] (!%p240_p9)  ;;  %s678_s17 = scalar_lea.vmem (!%p240_p9), %s897_s9, 128 }
  0x14   : > { %621 = vmatpush3.bf16.msra.mxu0 (!%p240_p9), %v620_v12  ;;  %v567_v43 = vld [vmem:[%s944_s6] ss:$0 sm:$0xff] (!%p240_p9)  ;;  %p679_p11 = scmp.ne.s32.totalorder (!%p240_p9), %s897_s9, %s678_s17 }
  0x15   : > { %s271_s15 = scalar_select %p270_p10, %s807_s28, 1  ;;  %627 = vmatpush3.bf16.msra.mxu1 %v626_v13 }
  0x16   : > { %628 = vmatprep.subr.bf16.mxu1 %v742_v3  ;;  %p680_p12 = pnand %p679_p11, %p824_p5  ;;  %s745_s28 = smov [#allocation2]  }
  0x17   : > { %s561_s16 = sshll.u32 %s271_s15, 3  ;;  %s895_s15 = scalar_lea.hbm %s945_s7, %s569_s29 }
  0x18   : > { %s273_s23 = scalar_lea.vmem %s938_s0, %s561_s16  ;;  %s484_s16 = scalar_lea.sflag [#allocation3], %s267_s18 }
  0x19   : > { %v274_v16 = vld [vmem:[%s273_s23] sm:$0xff]  ;;  %630 = vmatpush3.bf16.msra.mxu1 %v629_v17  ;;  %p681_p13 = pneg %p680_p12  ;;  %s682_s19 = sshll.u32 %s745_s28, 4  ;;  %s683_s19 = int_to_ptr.vmem [resolvable:$false] %s682_s19 }
  0x1a   : > { %595 = vmatmul.mubr.msk.f32.vlgmr.msra.gmra.mrb[0].mxu0 %vm286_vm1, %v274_v16  ;;  %631 = vmatprep.subr.bf16.mxu1 %v742_v3  ;;  %s684_s20 = scalar_lea.vmem %s683_s19, 256  ;;  %p685_p0 = scmp.lt.s32.totalorder %s897_s9, %s683_s19 }
  0x1b   : > { %p686_p1 = scmp.lt.s32.totalorder %s684_s20, %s678_s17 }
  0x1d   : > { %633 = vmatpush3.bf16.msra.mxu1 %v632_v20  ;;  %p687_p2 = por %p686_p1, %p685_p0 }
  0x1f   : > { %p688_p3 = pnand %p687_p2, %p681_p13 }
  0xed   : > { %v356_v22 = vpop.f32.mrb[0].mxu0 }
  0xee   : > { %v357_v23 = vadd.f32 %v562_v21, %v356_v22  ;;  %v596_v24 = vpop.f32.mrb[1].mxu0 }
  0xf0   : > { %v360_v25 = vmax.f32 %v357_v23, 0.0 }
  0xf2   : > { %614 = vmatmul.mubr.msk.f32.vlgmr.msra.gmra.mrb[0].mxu1 %vm369_vm2, %v360_v25 }
 0x1c5   : > { %v439_v26 = vpop.f32.mrb[0].mxu1 }
 0x1c6   : > { %v443_v28 = vadd.f32 %v439_v26, %v274_v16  ;;  %v615_v29 = vpop.f32.mrb[1].mxu1 }
 0x1c8   : > { %v451_v30 = vadd.f32 %v565_v27, %v443_v28 }
 0x1ca   : > { %v452_v31 = vsel %vm286_vm1, %v451_v30, 0.0 }
 0x1cb   : > { %453 = vadd.xlane.f32.xlu0 %v452_v31 }
 0x258   : > { %v454_v32 = vpop.xlane.xlu0 %453 }
 0x259   : > { %v456_v33 = vmul.f32 0.03125, %v454_v32 }
 0x25b   : > { %v457_v34 = vsub.f32 %v451_v30, %v456_v33 }
 0x25d   : > { %v458_v35 = vmul.f32 %v457_v34, %v457_v34 }
 0x25f   : > { %v459_v36 = vsel %vm286_vm1, %v458_v35, 0.0 }
 0x260   : > { %460 = vadd.xlane.f32.xlu0 %v459_v36 }
 0x2ed   : > { %v461_v37 = vpop.xlane.xlu0 %460 }
 0x2ee   : > { %v462_v38 = vmul.f32 0.03125, %v461_v37 }
 0x2f0   : > { %v463_v39 = vadd.f32 1e-05, %v462_v38 }
 0x2f2   : > { %676 = vrsqrt.f32 %v463_v39 }
 0x2fc   : > { %v677_v40 = vpop.eup %676 }
 0x2fd   : > { %v465_v42 = vmul.f32 %v677_v40, %v457_v34 }
 0x2ff   : > { %v473_v44 = vmul.f32 %v566_v41, %v465_v42 }
 0x301   : > { %v481_v45 = vadd.f32 %v567_v43, %v473_v44 }
 0x303   : > { %482 = vst.msk [vmem:[%s269_s8] sm:$0xff] %vm286_vm1, %v481_v45 }
 0x304   : > { %691 = shalt.err (!%p688_p3)
}
 0x305   : > { %s692_s18 = scalar_lea.hbm %s895_s15, 128  ;;  %s696_s23 = scalar_lea.hbm %s945_s7, 256 }
 0x306   : > { %p693_p4 = scmp.ne.s32.totalorder %s895_s15, %s692_s18  ;;  %p697_p9 = scmp.lt.u32.totalorder %s895_s15, %s945_s7 }
 0x307   : > { %p698_p10 = scmp.lt.u32.totalorder %s696_s23, %s692_s18  ;;  %p700_p12 = scmp.lt.u32.totalorder %s692_s18, %s895_s15 }
 0x308   : > { %p694_p7 = pnand %p693_p4, %p824_p5 }
 0x309   : > { %p699_p11 = por %p698_p10, %p697_p9 }
 0x30a   : > { %p695_p8 = pneg %p694_p7 }
 0x30b   : > { %p701_p13 = por %p700_p12, %p699_p11 }
 0x30d   : > { %p702_p0 = pnand %p701_p13, %p695_p8 }
 0x30f   : > { %705 = shalt.err (!%p702_p0)
}
 0x310   : > { %634 = dma.vmem_to_hbm [thread:$0]  (%p824_p5), %s897_s9, 128, %s895_s15, %s484_s16  }
 0x311 PF: > { %p640_p1 = scmp.ge.s32.totalorder %s740_s27, 2  ;;  %s509_s13 = sand.u32 1, %s728_s24  }
 0x312   : > { %s510_s14 = scalar_lea.sflag [#allocation3], %s509_s13 }
 0x313   : > { %p637_p2 = pnand %p640_p1, %p828_p6 }
 0x315   : > { %723 = dma.done.wait (!%p637_p2), %s510_s14, 128  }
 0x316   : > { %725 = vsyncadd (!%p637_p2), %s510_s14, 4294967168  ;;  %p17_p3 = scmp.ge.s32.totalorder %s811_s30, 4   ;;  %s948_s24 = smov %s732_s25 }
 0x317   : > { %s949_s25 = smov %s736_s26  ;;  %s950_s26 = smov %s822_s10 }
 0x318   : > { %s951_s27 = smov %s811_s30  ;;  %19 = sbr.rel (!%p17_p3) target bundleno = 3 (0x3), region = 83 }
 0x31f   :  { %515 = vsyncpa [#allocation3], 1 }
 0x320   :  { %517 = vsyncpa [#allocation3 + $0x1], 1 }

</bundles_post_ra>
